<compile_context>
chip_gen: v7x
topology: tpu7x:2x2x1
jax: 0.10.0
libtpu: 0.0.40
codegen_flags: <defaults>
</compile_context>

<pallas_src>
import jax
import jax.numpy as jnp
from jax.experimental import pallas as pl
from jax.experimental.pallas import tpu as pltpu

EPS = 1e-5  # torch.nn.InstanceNorm1d default


def _instance_norm(h, gamma, beta):
    """h: (C, L), gamma/beta: (C, 1). Per-channel biased variance over L."""
    mean = jnp.mean(h, axis=-1, keepdims=True)
    var = jnp.mean(jnp.square(h - mean), axis=-1, keepdims=True)
    return (h - mean) * jax.lax.rsqrt(var + EPS) * gamma + beta


def _im2col_same(x, K, P):
    """x: (C, L) -> (K*C, L): the K 'same'-padded shifted views stacked along the
    channel axis, so a K-tap conv becomes one (Cout, K*C) @ (K*C, L) matmul."""
    C, L = x.shape
    if P > 0:
        z = jnp.zeros((C, P), x.dtype)
        x = jnp.concatenate([z, x, z], axis=-1)          # (C, L + 2P), in registers
    return jnp.concatenate([x[:, k:k + L] for k in range(K)], axis=0)


def _flatten_conv_weight(w):
    """PyTorch Conv1d weight (Cout, Cin, K) -> (Cout, K*Cin), tap-major to match
    the row order produced by _im2col_same."""
    cout, cin, k = w.shape
    return jnp.transpose(w, (0, 2, 1)).reshape(cout, k * cin)


def residual_kernel(x_ref, w12_ref, b12_ref, g12_ref, be12_ref,
                    w3_ref, b3_ref, g3_ref, be3_ref, out_ref):
    x = x_ref[...]                     # (Cin, L) f32 — batch dim squeezed by the grid
    cin, L = x.shape
    two_cout, kcin = w12_ref.shape
    cout = two_cout // 2
    K = kcin // cin
    P = (K - 1) // 2
    mm_dtype = w12_ref.dtype           # bf16 on the MXU path

    # Stage 1: conv1d_layer and conv_layer_gates fused into ONE matmul
    # (shared im2col operand, weights stacked along Cout in the wrapper).
    cols = _im2col_same(x.astype(mm_dtype), K, P)                        # (K*Cin, L)
    h12 = jnp.dot(w12_ref[...], cols, preferred_element_type=jnp.float32)
    h12 = h12 + b12_ref[...]
    h12 = _instance_norm(h12, g12_ref[...], be12_ref[...])               # both branches at once
    glu = h12[:cout] * jax.nn.sigmoid(h12[cout:])                        # (Cout, L) f32

    # Stage 2: conv1d_out_layer + InstanceNorm + residual.  The padded GLU is
    # built in registers — no VMEM scratch round-trip, no unaligned masked store.
    cols2 = _im2col_same(glu.astype(mm_dtype), K, P)                     # (K*Cout, L)
    h2 = jnp.dot(w3_ref[...], cols2, preferred_element_type=jnp.float32) + b3_ref[...]
    h2 = _instance_norm(h2, g3_ref[...], be3_ref[...])
    out_ref[...] = (x + h2).astype(out_ref.dtype)


def residual_layer(x, params, matmul_dtype=jnp.bfloat16):
    """x: (B, Cin, L) f32. Conv1d stride=1, padding=(K-1)//2 ('same', residual-compatible)."""
    B, cin, L = x.shape
    cout, _, K = params["w1"].shape

    # One-time packing (plain XLA, outside the kernel): fuse conv1/conv_gate along
    # Cout, flatten the K taps into the contraction dim, cast weights to bf16.
    w12 = jnp.concatenate([_flatten_conv_weight(params["w1"]),
                           _flatten_conv_weight(params["w2"])], axis=0).astype(matmul_dtype)
    b12 = jnp.concatenate([params["b1"], params["b2"]]).reshape(2 * cout, 1)
    g12 = jnp.concatenate([params["g1"], params["g2"]]).reshape(2 * cout, 1)
    be12 = jnp.concatenate([params["be1"], params["be2"]]).reshape(2 * cout, 1)
    w3 = _flatten_conv_weight(params["w3"]).astype(matmul_dtype)          # (Cin, K*Cout)
    b3 = params["b3"].reshape(cin, 1)
    g3 = params["g3"].reshape(cin, 1)
    be3 = params["be3"].reshape(cin, 1)

    operands = (x, w12, b12, g12, be12, w3, b3, g3, be3)

    def _full_spec(a):
        nd = a.ndim
        return pl.BlockSpec(a.shape, lambda b: (0,) * nd)

    # Per-batch blocks keep the full L so InstanceNorm statistics stay exact.
    # (For production-sized L that overflows VMEM, tile L with a two-pass
    # sum/sumsq scheme; not needed at these shapes.)
    x_spec = pl.BlockSpec((None, cin, L), lambda b: (b, 0, 0))
    out_spec = pl.BlockSpec((None, cin, L), lambda b: (b, 0, 0))
    param_specs = [_full_spec(a) for a in operands[1:]]

    flops = 2 * B * L * (K * cin) * (2 * cout) + 2 * B * L * (K * cout) * cin
    transcendentals = B * L * cout + B * (2 * cout + cin)     # sigmoid + rsqrt
    param_bytes = sum(int(a.size) * a.dtype.itemsize for a in operands[1:])
    bytes_accessed = 2 * int(x.size) * 4 + B * param_bytes

    return pl.pallas_call(
        residual_kernel,
        out_shape=jax.ShapeDtypeStruct((B, cin, L), jnp.float32),
        grid=(B,),
        in_specs=[x_spec] + param_specs,
        out_specs=out_spec,
        compiler_params=pltpu.CompilerParams(
            # Batch axis parallel -> sharded across v7x's 2 TensorCores;
            # harmless no-op on single-core v5e/v6e.
            dimension_semantics=("parallel",),
            # Sized against v7x's 64 MiB physical VMEM; tiny at demo shapes.
            vmem_limit_bytes=32 * 1024 * 1024,
        ),
        cost_estimate=pl.CostEstimate(
            flops=int(flops),
            transcendentals=int(transcendentals),
            bytes_accessed=int(bytes_accessed),
        ),
    )(*operands)


def reference_layer(x, params, matmul_dtype=jnp.bfloat16):
    """Pure-JAX reference with the same math / MXU-operand dtype as the kernel."""
    _, cin, L = x.shape
    cout, _, K = params["w1"].shape
    P = (K - 1) // 2
    w1 = _flatten_conv_weight(params["w1"]).astype(matmul_dtype)
    w2 = _flatten_conv_weight(params["w2"]).astype(matmul_dtype)
    w3 = _flatten_conv_weight(params["w3"]).astype(matmul_dtype)

    def one(xb):                                              # xb: (Cin, L)
        cols = _im2col_same(xb.astype(matmul_dtype), K, P)
        h1 = jnp.dot(w1, cols, preferred_element_type=jnp.float32) + params["b1"][:, None]
        h1 = _instance_norm(h1, params["g1"][:, None], params["be1"][:, None])
        hg = jnp.dot(w2, cols, preferred_element_type=jnp.float32) + params["b2"][:, None]
        hg = _instance_norm(hg, params["g2"][:, None], params["be2"][:, None])
        glu = h1 * jax.nn.sigmoid(hg)
        cols2 = _im2col_same(glu.astype(matmul_dtype), K, P)
        h2 = jnp.dot(w3, cols2, preferred_element_type=jnp.float32) + params["b3"][:, None]
        h2 = _instance_norm(h2, params["g3"][:, None], params["be3"][:, None])
        return xb + h2

    return jax.vmap(one)(x)


def make_params(key, in_channels, out_channels, kernel_size):
    ks = jax.random.split(key, 6)
    s1 = 1.0 / (in_channels * kernel_size) ** 0.5
    s3 = 1.0 / (out_channels * kernel_size) ** 0.5
    u = jax.random.uniform
    return {
        # Conv1d weights in the PyTorch (Cout, Cin, K) layout.
        "w1": u(ks[0], (out_channels, in_channels, kernel_size), jnp.float32, -s1, s1),
        "b1": u(ks[1], (out_channels,), jnp.float32, -s1, s1),
        "w2": u(ks[2], (out_channels, in_channels, kernel_size), jnp.float32, -s1, s1),
        "b2": u(ks[3], (out_channels,), jnp.float32, -s1, s1),
        "w3": u(ks[4], (in_channels, out_channels, kernel_size), jnp.float32, -s3, s3),
        "b3": u(ks[5], (in_channels,), jnp.float32, -s3, s3),
        # InstanceNorm1d(affine=True) default init: weight=1, bias=0.
        "g1": jnp.ones((out_channels,), jnp.float32),
        "be1": jnp.zeros((out_channels,), jnp.float32),
        "g2": jnp.ones((out_channels,), jnp.float32),
        "be2": jnp.zeros((out_channels,), jnp.float32),
        "g3": jnp.ones((in_channels,), jnp.float32),
        "be3": jnp.zeros((in_channels,), jnp.float32),
    }


if __name__ == "__main__":
    # Small but TPU-friendly: L=128 keeps the kernel's last (lane) dim dense.
    B, C_IN, C_OUT, L, K = 2, 4, 8, 128, 3   # padding = 1 ("same", residual-compatible)
    key = jax.random.PRNGKey(0)
    kx, kp = jax.random.split(key)
    x = jax.random.normal(kx, (B, C_IN, L), jnp.float32)
    params = make_params(kp, C_IN, C_OUT, K)

    out = jax.block_until_ready(residual_layer(x, params))
    ref = jax.block_until_ready(reference_layer(x, params))

    assert out.shape == (B, C_IN, L)
    assert jnp.allclose(out, ref, atol=1e-3, rtol=1e-3), float(jnp.max(jnp.abs(out - ref)))
    print("KERNEL_OK")
</pallas_src>

<mosaic_0001>
module attributes {stable_mosaic.version = 11 : i64} {
  func.func @residual_kernel(%arg0: i32, %arg1: memref<1x4x128xf32, #tpu.memory_space<vmem>>, %arg2: memref<16x12xbf16, #tpu.memory_space<vmem>>, %arg3: memref<16x1xf32, #tpu.memory_space<vmem>>, %arg4: memref<16x1xf32, #tpu.memory_space<vmem>>, %arg5: memref<16x1xf32, #tpu.memory_space<vmem>>, %arg6: memref<4x24xbf16, #tpu.memory_space<vmem>>, %arg7: memref<4x1xf32, #tpu.memory_space<vmem>>, %arg8: memref<4x1xf32, #tpu.memory_space<vmem>>, %arg9: memref<4x1xf32, #tpu.memory_space<vmem>>, %arg10: memref<1x4x128xf32, #tpu.memory_space<vmem>>) attributes {dimension_semantics = [#tpu.dimension_semantics<parallel>], iteration_bounds = array<i64: 2>, scalar_prefetch = 0 : i64, scratch_operands = 0 : i64, tpu.core_type = #tpu.core_type<tc>, window_params = [{transform_indices = @transform_0, window_bounds = array<i64: 1, 4, 128>}, {pipeline_mode = #tpu.pipeline_mode<synchronous>, transform_indices = @transform_1, window_bounds = array<i64: 16, 12>}, {pipeline_mode = #tpu.pipeline_mode<synchronous>, transform_indices = @transform_2, window_bounds = array<i64: 16, 1>}, {pipeline_mode = #tpu.pipeline_mode<synchronous>, transform_indices = @transform_3, window_bounds = array<i64: 16, 1>}, {pipeline_mode = #tpu.pipeline_mode<synchronous>, transform_indices = @transform_4, window_bounds = array<i64: 16, 1>}, {pipeline_mode = #tpu.pipeline_mode<synchronous>, transform_indices = @transform_5, window_bounds = array<i64: 4, 24>}, {pipeline_mode = #tpu.pipeline_mode<synchronous>, transform_indices = @transform_6, window_bounds = array<i64: 4, 1>}, {pipeline_mode = #tpu.pipeline_mode<synchronous>, transform_indices = @transform_7, window_bounds = array<i64: 4, 1>}, {pipeline_mode = #tpu.pipeline_mode<synchronous>, transform_indices = @transform_8, window_bounds = array<i64: 4, 1>}, {transform_indices = @transform_9, window_bounds = array<i64: 1, 4, 128>}]} {
    %c0 = arith.constant 0 : index
    %c0_0 = arith.constant 0 : index
    %c0_1 = arith.constant 0 : index
    %0 = vector.load %arg1[%c0, %c0_0, %c0_1] : memref<1x4x128xf32, #tpu.memory_space<vmem>>, vector<1x4x128xf32>
    %1 = vector.shape_cast %0 : vector<1x4x128xf32> to vector<4x128xf32>
    %2 = arith.truncf %1 : vector<4x128xf32> to vector<4x128xbf16>
    %cst = arith.constant 0.000000e+00 : bf16
    %3 = vector.broadcast %cst : bf16 to vector<4x1xbf16>
    %4 = tpu.concatenate %3, %2, %3 in 1 : vector<4x1xbf16>, vector<4x128xbf16>, vector<4x1xbf16> -> vector<4x130xbf16>
    %5 = vector.extract_strided_slice %4 {offsets = [0, 0], sizes = [4, 128], strides = [1, 1]} : vector<4x130xbf16> to vector<4x128xbf16>
    %6 = vector.extract_strided_slice %4 {offsets = [0, 1], sizes = [4, 128], strides = [1, 1]} : vector<4x130xbf16> to vector<4x128xbf16>
    %7 = vector.extract_strided_slice %4 {offsets = [0, 2], sizes = [4, 128], strides = [1, 1]} : vector<4x130xbf16> to vector<4x128xbf16>
    %8 = tpu.concatenate %5, %6, %7 in 0 : vector<4x128xbf16>, vector<4x128xbf16>, vector<4x128xbf16> -> vector<12x128xbf16>
    %c0_2 = arith.constant 0 : index
    %c0_3 = arith.constant 0 : index
    %9 = vector.load %arg2[%c0_2, %c0_3] : memref<16x12xbf16, #tpu.memory_space<vmem>>, vector<16x12xbf16>
    %cst_4 = arith.constant dense<0.000000e+00> : vector<16x128xf32>
    %10 = tpu.matmul %9, %8, %cst_4 {dimension_numbers = #tpu.dot_dimension_numbers<[1], [0], [0], [1], [0, 0, 1, 1], [], []>} : vector<16x12xbf16>, vector<12x128xbf16>, vector<16x128xf32> -> vector<16x128xf32>
    %c0_5 = arith.constant 0 : index
    %c0_6 = arith.constant 0 : index
    %11 = vector.load %arg3[%c0_5, %c0_6] : memref<16x1xf32, #tpu.memory_space<vmem>>, vector<16x1xf32>
    %12 = vector.broadcast %11 : vector<16x1xf32> to vector<16x128xf32>
    %13 = arith.addf %10, %12 : vector<16x128xf32>
    %c0_7 = arith.constant 0 : index
    %c0_8 = arith.constant 0 : index
    %14 = vector.load %arg4[%c0_7, %c0_8] : memref<16x1xf32, #tpu.memory_space<vmem>>, vector<16x1xf32>
    %c0_9 = arith.constant 0 : index
    %c0_10 = arith.constant 0 : index
    %15 = vector.load %arg5[%c0_9, %c0_10] : memref<16x1xf32, #tpu.memory_space<vmem>>, vector<16x1xf32>
    %cst_11 = arith.constant dense<0.000000e+00> : vector<16xf32>
    %16 = vector.multi_reduction <add>, %13, %cst_11 [1] : vector<16x128xf32> to vector<16xf32>
    %17 = vector.shape_cast %16 : vector<16xf32> to vector<16x1xf32>
    %cst_12 = arith.constant 1.280000e+02 : f32
    %18 = vector.broadcast %cst_12 : f32 to vector<16x1xf32>
    %19 = arith.divf %17, %18 : vector<16x1xf32>
    %20 = vector.broadcast %19 : vector<16x1xf32> to vector<16x128xf32>
    %21 = arith.subf %13, %20 : vector<16x128xf32>
    %22 = arith.mulf %21, %21 : vector<16x128xf32>
    %cst_13 = arith.constant dense<0.000000e+00> : vector<16xf32>
    %23 = vector.multi_reduction <add>, %22, %cst_13 [1] : vector<16x128xf32> to vector<16xf32>
    %24 = vector.shape_cast %23 : vector<16xf32> to vector<16x1xf32>
    %cst_14 = arith.constant 1.280000e+02 : f32
    %25 = vector.broadcast %cst_14 : f32 to vector<16x1xf32>
    %26 = arith.divf %24, %25 : vector<16x1xf32>
    %27 = vector.broadcast %19 : vector<16x1xf32> to vector<16x128xf32>
    %28 = arith.subf %13, %27 : vector<16x128xf32>
    %cst_15 = arith.constant 9.99999974E-6 : f32
    %29 = vector.broadcast %cst_15 : f32 to vector<16x1xf32>
    %30 = arith.addf %26, %29 : vector<16x1xf32>
    %31 = math.rsqrt %30 : vector<16x1xf32>
    %32 = vector.broadcast %31 : vector<16x1xf32> to vector<16x128xf32>
    %33 = arith.mulf %28, %32 : vector<16x128xf32>
    %34 = vector.broadcast %14 : vector<16x1xf32> to vector<16x128xf32>
    %35 = arith.mulf %33, %34 : vector<16x128xf32>
    %36 = vector.broadcast %15 : vector<16x1xf32> to vector<16x128xf32>
    %37 = arith.addf %35, %36 : vector<16x128xf32>
    %38 = vector.extract_strided_slice %37 {offsets = [0, 0], sizes = [8, 128], strides = [1, 1]} : vector<16x128xf32> to vector<8x128xf32>
    %39 = vector.extract_strided_slice %37 {offsets = [8, 0], sizes = [8, 128], strides = [1, 1]} : vector<16x128xf32> to vector<8x128xf32>
    %40 = arith.negf %39 : vector<8x128xf32>
    %41 = math.exp %40 : vector<8x128xf32>
    %cst_16 = arith.constant 1.000000e+00 : f32
    %42 = vector.broadcast %cst_16 : f32 to vector<8x128xf32>
    %43 = arith.addf %42, %41 : vector<8x128xf32>
    %44 = arith.divf %42, %43 : vector<8x128xf32>
    %45 = arith.mulf %38, %44 : vector<8x128xf32>
    %46 = arith.truncf %45 : vector<8x128xf32> to vector<8x128xbf16>
    %cst_17 = arith.constant 0.000000e+00 : bf16
    %47 = vector.broadcast %cst_17 : bf16 to vector<8x1xbf16>
    %48 = tpu.concatenate %47, %46, %47 in 1 : vector<8x1xbf16>, vector<8x128xbf16>, vector<8x1xbf16> -> vector<8x130xbf16>
    %49 = vector.extract_strided_slice %48 {offsets = [0, 0], sizes = [8, 128], strides = [1, 1]} : vector<8x130xbf16> to vector<8x128xbf16>
    %50 = vector.extract_strided_slice %48 {offsets = [0, 1], sizes = [8, 128], strides = [1, 1]} : vector<8x130xbf16> to vector<8x128xbf16>
    %51 = vector.extract_strided_slice %48 {offsets = [0, 2], sizes = [8, 128], strides = [1, 1]} : vector<8x130xbf16> to vector<8x128xbf16>
    %52 = tpu.concatenate %49, %50, %51 in 0 : vector<8x128xbf16>, vector<8x128xbf16>, vector<8x128xbf16> -> vector<24x128xbf16>
    %c0_18 = arith.constant 0 : index
    %c0_19 = arith.constant 0 : index
    %53 = vector.load %arg6[%c0_18, %c0_19] : memref<4x24xbf16, #tpu.memory_space<vmem>>, vector<4x24xbf16>
    %cst_20 = arith.constant dense<0.000000e+00> : vector<4x128xf32>
    %54 = tpu.matmul %53, %52, %cst_20 {dimension_numbers = #tpu.dot_dimension_numbers<[1], [0], [0], [1], [0, 0, 1, 1], [], []>} : vector<4x24xbf16>, vector<24x128xbf16>, vector<4x128xf32> -> vector<4x128xf32>
    %c0_21 = arith.constant 0 : index
    %c0_22 = arith.constant 0 : index
    %55 = vector.load %arg7[%c0_21, %c0_22] : memref<4x1xf32, #tpu.memory_space<vmem>>, vector<4x1xf32>
    %56 = vector.broadcast %55 : vector<4x1xf32> to vector<4x128xf32>
    %57 = arith.addf %54, %56 : vector<4x128xf32>
    %c0_23 = arith.constant 0 : index
    %c0_24 = arith.constant 0 : index
    %58 = vector.load %arg8[%c0_23, %c0_24] : memref<4x1xf32, #tpu.memory_space<vmem>>, vector<4x1xf32>
    %c0_25 = arith.constant 0 : index
    %c0_26 = arith.constant 0 : index
    %59 = vector.load %arg9[%c0_25, %c0_26] : memref<4x1xf32, #tpu.memory_space<vmem>>, vector<4x1xf32>
    %cst_27 = arith.constant dense<0.000000e+00> : vector<4xf32>
    %60 = vector.multi_reduction <add>, %57, %cst_27 [1] : vector<4x128xf32> to vector<4xf32>
    %61 = vector.shape_cast %60 : vector<4xf32> to vector<4x1xf32>
    %cst_28 = arith.constant 1.280000e+02 : f32
    %62 = vector.broadcast %cst_28 : f32 to vector<4x1xf32>
    %63 = arith.divf %61, %62 : vector<4x1xf32>
    %64 = vector.broadcast %63 : vector<4x1xf32> to vector<4x128xf32>
    %65 = arith.subf %57, %64 : vector<4x128xf32>
    %66 = arith.mulf %65, %65 : vector<4x128xf32>
    %cst_29 = arith.constant dense<0.000000e+00> : vector<4xf32>
    %67 = vector.multi_reduction <add>, %66, %cst_29 [1] : vector<4x128xf32> to vector<4xf32>
    %68 = vector.shape_cast %67 : vector<4xf32> to vector<4x1xf32>
    %cst_30 = arith.constant 1.280000e+02 : f32
    %69 = vector.broadcast %cst_30 : f32 to vector<4x1xf32>
    %70 = arith.divf %68, %69 : vector<4x1xf32>
    %71 = vector.broadcast %63 : vector<4x1xf32> to vector<4x128xf32>
    %72 = arith.subf %57, %71 : vector<4x128xf32>
    %cst_31 = arith.constant 9.99999974E-6 : f32
    %73 = vector.broadcast %cst_31 : f32 to vector<4x1xf32>
    %74 = arith.addf %70, %73 : vector<4x1xf32>
    %75 = math.rsqrt %74 : vector<4x1xf32>
    %76 = vector.broadcast %75 : vector<4x1xf32> to vector<4x128xf32>
    %77 = arith.mulf %72, %76 : vector<4x128xf32>
    %78 = vector.broadcast %58 : vector<4x1xf32> to vector<4x128xf32>
    %79 = arith.mulf %77, %78 : vector<4x128xf32>
    %80 = vector.broadcast %59 : vector<4x1xf32> to vector<4x128xf32>
    %81 = arith.addf %79, %80 : vector<4x128xf32>
    %82 = arith.addf %1, %81 : vector<4x128xf32>
    %c0_32 = arith.constant 0 : index
    %c0_33 = arith.constant 0 : index
    %c0_34 = arith.constant 0 : index
    %83 = vector.load %arg10[%c0_32, %c0_33, %c0_34] : memref<1x4x128xf32, #tpu.memory_space<vmem>>, vector<1x4x128xf32>
    %84 = vector.shape_cast %83 : vector<1x4x128xf32> to vector<4x128xf32>
    %85 = vector.shape_cast %82 : vector<4x128xf32> to vector<1x4x128xf32>
    tpu.vector_store %arg10[%c0_32, %c0_33, %c0_34], %85 {strides = array<i32>} : memref<1x4x128xf32, #tpu.memory_space<vmem>>, vector<1x4x128xf32>,
    return
  }
  func.func @transform_0(%arg0: i32) -> (i32, i32, i32) {
    %c0_i32 = arith.constant 0 : i32
    %c0_i32_0 = arith.constant 0 : i32
    %c0_i32_1 = arith.constant 0 : i32
    return %arg0, %c0_i32, %c0_i32_0 : i32, i32, i32
  }
  func.func @transform_1(%arg0: i32) -> (i32, i32) {
    %c0_i32 = arith.constant 0 : i32
    %c0_i32_0 = arith.constant 0 : i32
    %c0_i32_1 = arith.constant 0 : i32
    return %c0_i32, %c0_i32_0 : i32, i32
  }
  func.func @transform_2(%arg0: i32) -> (i32, i32) {
    %c0_i32 = arith.constant 0 : i32
    %c0_i32_0 = arith.constant 0 : i32
    %c0_i32_1 = arith.constant 0 : i32
    return %c0_i32, %c0_i32_0 : i32, i32
  }
  func.func @transform_3(%arg0: i32) -> (i32, i32) {
    %c0_i32 = arith.constant 0 : i32
    %c0_i32_0 = arith.constant 0 : i32
    %c0_i32_1 = arith.constant 0 : i32
    return %c0_i32, %c0_i32_0 : i32, i32
  }
  func.func @transform_4(%arg0: i32) -> (i32, i32) {
    %c0_i32 = arith.constant 0 : i32
    %c0_i32_0 = arith.constant 0 : i32
    %c0_i32_1 = arith.constant 0 : i32
    return %c0_i32, %c0_i32_0 : i32, i32
  }
  func.func @transform_5(%arg0: i32) -> (i32, i32) {
    %c0_i32 = arith.constant 0 : i32
    %c0_i32_0 = arith.constant 0 : i32
    %c0_i32_1 = arith.constant 0 : i32
    return %c0_i32, %c0_i32_0 : i32, i32
  }
  func.func @transform_6(%arg0: i32) -> (i32, i32) {
    %c0_i32 = arith.constant 0 : i32
    %c0_i32_0 = arith.constant 0 : i32
    %c0_i32_1 = arith.constant 0 : i32
    return %c0_i32, %c0_i32_0 : i32, i32
  }
  func.func @transform_7(%arg0: i32) -> (i32, i32) {
    %c0_i32 = arith.constant 0 : i32
    %c0_i32_0 = arith.constant 0 : i32
    %c0_i32_1 = arith.constant 0 : i32
    return %c0_i32, %c0_i32_0 : i32, i32
  }
  func.func @transform_8(%arg0: i32) -> (i32, i32) {
    %c0_i32 = arith.constant 0 : i32
    %c0_i32_0 = arith.constant 0 : i32
    %c0_i32_1 = arith.constant 0 : i32
    return %c0_i32, %c0_i32_0 : i32, i32
  }
  func.func @transform_9(%arg0: i32) -> (i32, i32, i32) {
    %c0_i32 = arith.constant 0 : i32
    %c0_i32_0 = arith.constant 0 : i32
    %c0_i32_1 = arith.constant 0 : i32
    return %arg0, %c0_i32, %c0_i32_0 : i32, i32, i32
  }
}

</mosaic_0001>

<bundles_post_ra>
// kernel: tpu_custom_call.1
= control target key start
LH: loop header
LB: loop body
LE: loop exit
PB: predicated region body
PF: predicated region fallthrough
CT: control target
= control target key end

     0   :  { %14 = vsyncpa [#allocation3], 0  ;;  %s1046_s0 = inlined_call_operand.vmem [shape: f32[2,4,128], index: 0, kind: input, shape index: {}]   ;;  %s1047_s1 = inlined_call_operand.vmem [shape: bf16[16,12], index: 1, kind: input, shape index: {}]   ;;  %s1048_s2 = inlined_call_operand.vmem [shape: f32[16,1], index: 2, kind: input, shape index: {}]   ;;  %s1049_s3 = inlined_call_operand.vmem [shape: f32[16,1], index: 3, kind: input, shape index: {}]   ;;  %s1050_s4 = inlined_call_operand.vmem [shape: f32[16,1], index: 4, kind: input, shape index: {}]   ;;  %s1051_s5 = inlined_call_operand.vmem [shape: bf16[4,24], index: 5, kind: input, shape index: {}]   ;;  %s1052_s6 = inlined_call_operand.vmem [shape: f32[4,1], index: 6, kind: input, shape index: {}]   ;;  %s1053_s7 = inlined_call_operand.vmem [shape: f32[4,1], index: 7, kind: input, shape index: {}]   ;;  %s1054_s8 = inlined_call_operand.vmem [shape: f32[4,1], index: 8, kind: input, shape index: {}]   ;;  %s1055_s9 = inlined_call_operand.hbm [shape: f32[2,4,128], index: 9, kind: output, shape index: {}]  }
   0x1   :  { %16 = vsyncpa [#allocation3 + $0x1], 0  ;;  %s880_s30 = smov 0   ;;  %s882_s10 = smov 0  }
   0x2   :  { %s884_s11 = smov 0   ;;  %s886_s12 = smov 0  }
   0x3 LB: > { %s901_s13 = sadd.s32 4294967295, %s821_s12   ;;  %s668_s14 = sadd.s32 4294967294, %s821_s12   ;;  %s821_s12 = sphi %s886_s12, %s1061_s12   ;;  %s817_s11 = sphi %s884_s11, %s1060_s11   ;;  %s813_s10 = sphi %s882_s10, %s1059_s10   ;;  %s809_s30 = sphi %s880_s30, %s1058_s30  }
   0x4   : > { %s905_s15 = sadd.s32 1, %s821_s12   ;;  %s223_s16 = sadd.s32 1, %s817_s11 }
   0x5   : > { %s220_s17 = ssub.s32 %s821_s12, %s905_s15  ;;  %p233_p0 = scmp.ne.s32.totalorder %s817_s11, %s813_s10 }
   0x6   : > { %p221_p1 = scmp.eq.s32.totalorder %s220_s17, 0  ;;  %p234_p2 = scmp.eq.s32.totalorder %s901_s13, 1 }
   0x7   : > { %p239_p3 = scmp.ne.s32.totalorder %s813_s10, %s809_s30  ;;  %p240_p4 = scmp.eq.s32.totalorder %s668_s14, 1 }
   0x8   : > { %s916_s18 = scalar_select %p221_p1, %s817_s11, %s223_s16  }
   0x9   : > { %p918_p5 = por %p234_p2, %p233_p0  ;;  %p922_p6 = por %p240_p4, %p239_p3 }
   0xa   : > { %p671_p7 = scmp.ge.s32.totalorder %s821_s12, 1  ;;  %p289_p8 = scmp.lt.s32.totalorder %s821_s12, 3 }
   0xc   : > { %p290_p9 = pnand %p671_p7, %p289_p8 }
   0xd   : > { %p324_p10 = scmp.lt.s32.totalorder (!%p290_p9), %s901_s13, 1  ;;  %s823_s26 = smov (!%p290_p9), 1   ;;  %v824_v2 = vmov (!%p290_p9), 0.0   ;;  %vm334_vm0 = vcmask (!%p290_p9), 7168   ;;  %vm825_vm1 = vmmov (!%p290_p9), 0   ;;  %v826_v8 = vmov (!%p290_p9), 0  }
   0xe   : > { %293 = sbr.rel (%p290_p9) target bundleno = 1615 (0x64f), region = 56  ;;  %687 = vmatprep.subr.bf16.mxu0 (!%p290_p9), %v824_v2  ;;  %693 = vmatprep.subr.bf16.mxu1 (!%p290_p9), %v824_v2  ;;  %s827_s27 = smov (!%p290_p9), 127   ;;  %v365_v11 = vld [vmem:[%s1048_s2] sm:$0xff] (!%p290_p9)  ;;  %v366_v12 = vld [vmem:[%s1048_s2 + $0x8] sm:$0xff] (!%p290_p9)  ;;  %vm347_vm2 = vcmask (!%p290_p9), 1039360   ;;  %vm355_vm3 = vcmask (!%p290_p9), 1031168  }
   0xf   : > { %689 = vmatprep.mubr.msk.bf16.mxu0 (!%p290_p9), %vm825_vm1, %v824_v2  ;;  %697 = vmatprep.mubr.msk.bf16.mxu1 (!%p290_p9), %vm825_vm1, %v824_v2  ;;  %s828_s28 = smov (!%p290_p9), 126   ;;  %vm357_vm4 = vcmask (!%p290_p9), 1041408   ;;  %vm360_vm5 = vcmask (!%p290_p9), 1043456   ;;  %vm386_vm6 = vcmask (!%p290_p9), 1045504   ;;  %v748_v22 = vld [vmem:[%s1047_s1] sm:$0xff] (!%p290_p9)   ;;  %vm382_vm7 = vcmask (!%p290_p9), 97280  }
  0x10   : > { %747 = vset.pattern.permute.xlu0 (!%p290_p9), %v826_v8  ;;  %746 = vset.pattern.permute.xlu1 (!%p290_p9), %v826_v8  ;;  %v431_v31 = vld [vmem:[%s1049_s3 + $0x8] sm:$0xff] (!%p290_p9)  ;;  %v430_v32 = vld [vmem:[%s1049_s3] sm:$0xff] (!%p290_p9)  ;;  %vm519_vm8 = vcmask (!%p290_p9), 195584   ;;  %s321_s14 = sand.u32 (!%p290_p9), 1, %s813_s10   ;;  %s679_s17 = sshll.u32 (!%p290_p9), %s901_s13, 6 }
  0x11   : > { %v433_v41 = vld [vmem:[%s1050_s4 + $0x8] sm:$0xff] (!%p290_p9)  ;;  %v432_v42 = vld [vmem:[%s1050_s4] sm:$0xff] (!%p290_p9)  ;;  %s672_s16 = sshll.u32 (!%p290_p9), %s321_s14, 2 }
  0x15   : > { %s325_s21 = scalar_select %p324_p10, %s901_s13, 1 }
  0x16   : > { %s829_s13 = smov [#allocation2]  }
  0x17   : > { %s673_s22 = sshll.u32 %s325_s21, 2  ;;  %s323_s21 = scalar_lea.vmem [#allocation2], %s672_s16 }
  0x18   : > { %s327_s25 = scalar_lea.vmem %s1046_s0, %s673_s22  ;;  %s609_s22 = sshll.u32 %s323_s21, 4  ;;  %s1006_s22 = int_to_ptr.vmem [resolvable:$true] %s609_s22 }
  0x19   : > { %v933_v0 = vld [vmem:[%s327_s25] sm:$0xf]  ;;  %s759_s24 = scalar_lea.vmem %s1006_s22, 64  ;;  %s763_s25 = sshll.u32 %s829_s13, 4  ;;  %s764_s25 = int_to_ptr.vmem [resolvable:$false] %s763_s25 }
  0x1a   : > { %v330_v1 = vpack.c.bf16 %v933_v0, %v933_v0  ;;  %p760_p11 = scmp.ne.s32.totalorder %s1006_s22, %s759_s24  ;;  %s765_s29 = scalar_lea.vmem %s764_s25, 128 }
  0x1b   : > { %p766_p0 = scmp.lt.s32.totalorder %s1006_s22, %s764_s25  ;;  %p767_p1 = scmp.lt.s32.totalorder %s765_s29, %s759_s24 }
  0x1c   : > { %332 = vrot.lane.b32.xlu0 %v330_v1, %s823_s26  ;;  %p761_p12 = pnand %p760_p11, %p918_p5 }
  0x1d   : > { %p768_p2 = por %p767_p1, %p766_p0 }
  0x1e   : > { %p762_p13 = pneg %p761_p12 }
  0x20   : > { %p769_p3 = pnand %p768_p2, %p762_p13 }
  0x8e   : > { %v333_v3 = vpop.permute.xlu0 %332 }
  0x8f   : > { %v337_v4 = vsel %vm334_vm0, 0, %v333_v3  ;;  %v338_v5 = vsel %vm334_vm0, %v333_v3, 0 }
  0x90   : > { %v342_v6 = vrot.slane %v338_v5, 6  ;;  %v341_v7 = vrot.slane %v337_v4, 6  ;;  %v350_v9 = vrot.slane %v338_v5, 4  ;;  %v349_v10 = vrot.slane %v337_v4, 4 }
  0x92   : > { %345 = vrot.lane.b32.xlu1 %v342_v6, %s827_s27  ;;  %343 = vrot.lane.b32.xlu0 %v341_v7, %s827_s27 }
  0x96   : > { %351 = vrot.lane.b32.xlu1 %v349_v10, %s828_s28  ;;  %353 = vrot.lane.b32.xlu0 %v350_v9, %s828_s28  ;;  %v513_v10 = vld [vmem:[%s1052_s6] sm:$0xf] }
  0x9a   : > { %369 = vperm.xlu0 %747, %v365_v11   ;;  %374 = vperm.xlu1 %746, %v366_v12  }
 0x104   : > { %v346_v13 = vpop.permute.xlu1 %345  ;;  %v344_v14 = vpop.permute.xlu0 %343 }
 0x105   : > { %v348_v15 = vsel %vm347_vm2, %v344_v14, %v346_v13 }
 0x106   : > { %v359_v19 = vsel %vm357_vm4, %v337_v4, %v348_v15 }
 0x108   : > { %v352_v16 = vpop.permute.xlu1 %351  ;;  %v354_v17 = vpop.permute.xlu0 %353 }
 0x109   : > { %v356_v18 = vsel %vm355_vm3, %v352_v16, %v354_v17 }
 0x10a   : > { %v362_v20 = vsel %vm360_vm5, %v359_v19, %v356_v18  ;;  %v512_v19 = vld [vmem:[%s1051_s5] sm:$0x3] }
 0x10b   : > { %v387_v21 = vsel %vm386_vm6, %v362_v20, 0 }
 0x10c   : > { %688 = vmatpush3.bf16.msra.mxu0 %v387_v21 }
 0x10f   : > { %690 = vmatmul.mubr.msk.bf16.vlgmr.msra.gmra.mrb[0].mxu0 %vm382_vm7, %v748_v22 }
 0x119   : > { %v370_v23 = vpop.permute.xlu0 %369  ;;  %v375_v25 = vpop.permute.xlu1 %374 }
 0x1e2   : > { %v423_v24 = vpop.f32.mrb[0].mxu0 }
 0x1e3   : > { %v424_v26 = vadd.f32 %v423_v24, %v370_v23  ;;  %v691_v27 = vpop.f32.mrb[1].mxu0 }
 0x1e4   : > { %v426_v28 = vpop.f32.mrb[2].mxu0 }
 0x1e5   : > { %v427_v29 = vadd.f32 %v426_v28, %v375_v25  ;;  %v692_v30 = vpop.f32.mrb[3].mxu0  ;;  %434 = vadd.xlane.f32.xlu0 %v424_v26 }
 0x1e7   : > { %436 = vadd.xlane.f32.xlu1 %v427_v29 }
 0x1fb   : > { %464 = vperm.xlu0 %747, %v431_v31  }
 0x1ff   : > { %459 = vperm.xlu0 %747, %v430_v32   ;;  %v567_v32 = vld [vmem:[%s1054_s8] sm:$0xf] }
 0x272   : > { %v435_v33 = vpop.xlane.xlu0 %434 }
 0x273   : > { %v439_v34 = vmul.f32 0.0078125, %v435_v33 }
 0x274   : > { %v437_v35 = vpop.xlane.xlu1 %436 }
 0x275   : > { %v441_v36 = vsub.f32 %v424_v26, %v439_v34  ;;  %v440_v37 = vmul.f32 0.0078125, %v437_v35 }
 0x277   : > { %v442_v38 = vsub.f32 %v427_v29, %v440_v37  ;;  %v443_v39 = vmul.f32 %v441_v36, %v441_v36 }
 0x279   : > { %445 = vadd.xlane.f32.xlu1 %v443_v39  ;;  %v444_v40 = vmul.f32 %v442_v38, %v442_v38 }
 0x27a   : > { %v465_v49 = vpop.permute.xlu0 %464 }
 0x27d   : > { %447 = vadd.xlane.f32.xlu1 %v444_v40 }
 0x27e   : > { %v460_v60 = vpop.permute.xlu0 %459 }
 0x28e   : > { %476 = vperm.xlu1 %746, %v433_v41  }
 0x292   : > { %471 = vperm.xlu1 %746, %v432_v42  }
 0x306   : > { %v446_v43 = vpop.xlane.xlu1 %445 }
 0x307   : > { %v449_v50 = vmul.f32 0.0078125, %v446_v43 }
 0x309   : > { %v451_v54 = vadd.f32 1e-05, %v449_v50 }
 0x30a   : > { %v448_v44 = vpop.xlane.xlu1 %447 }
 0x30b   : > { %v450_v45 = vmul.f32 0.0078125, %v448_v44 }
 0x30d   : > { %v452_v46 = vadd.f32 1e-05, %v450_v45 }
 0x30e   : > { %v477_v52 = vpop.permute.xlu1 %476 }
 0x30f   : > { %749 = vrsqrt.f32 %v452_v46 }
 0x312   : > { %v472_v62 = vpop.permute.xlu1 %471 }
 0x319   : > { %v750_v47 = vpop.eup %749 }
 0x31a   : > { %v456_v48 = vmul.f32 %v750_v47, %v442_v38 }
 0x31c   : > { %v468_v51 = vmul.f32 %v465_v49, %v456_v48 }
 0x31e   : > { %v480_v53 = vadd.f32 %v477_v52, %v468_v51 }
 0x320   : > { %v676_v55 = vmul.f32 -1.442695, %v480_v53 }
 0x322   : > { %751 = vpow2.f32 %v676_v55 }
 0x323   : > { %753 = vrsqrt.f32 %v451_v54 }
 0x32c   : > { %v752_v56 = vpop.eup %751 }
 0x32d   : > { %v754_v57 = vpop.eup %753  ;;  %v484_v58 = vadd.f32 1.0, %v752_v56 }
 0x32e   : > { %v455_v59 = vmul.f32 %v754_v57, %v441_v36 }
 0x32f   : > { %755 = vrcp.f32 %v484_v58 }
 0x330   : > { %v467_v61 = vmul.f32 %v460_v60, %v455_v59 }
 0x332   : > { %v479_v63 = vadd.f32 %v472_v62, %v467_v61 }
 0x339   : > { %v756_v1 = vpop.eup %755 }
 0x33a   : > { %v487_v3 = vmul.f32 %v756_v1, %v479_v63 }
 0x33c   : > { %v488_v4 = vpack.c.bf16 %v487_v3, %v487_v3 }
 0x33e   : > { %490 = vrot.lane.b32.xlu0 %v488_v4, %s823_s26 }
 0x3b0   : > { %v491_v5 = vpop.permute.xlu0 %490 }
 0x3b1   : > { %v493_v6 = vsel %vm334_vm0, 0, %v491_v5  ;;  %v494_v7 = vsel %vm334_vm0, %v491_v5, 0 }
 0x3b2   : > { %v498_v8 = vrot.slane %v494_v7, 4  ;;  %v497_v9 = vrot.slane %v493_v6, 4 }
 0x3b4   : > { %501 = vrot.lane.b32.xlu0 %v498_v8, %s827_s27  ;;  %499 = vrot.lane.b32.xlu1 %v497_v9, %s827_s27  ;;  %s1004_s27 = scalar_lea.hbm %s1055_s9, %s679_s17 }
 0x3b8   : > { %506 = vrot.lane.b32.xlu0 %v494_v7, %s828_s28  ;;  %504 = vrot.lane.b32.xlu1 %v493_v6, %s828_s28  ;;  %s596_s28 = scalar_lea.sflag [#allocation3], %s321_s14 }
 0x3bc   : > { %516 = vperm.xlu1 %746, %v513_v10  }
 0x426   : > { %v502_v11 = vpop.permute.xlu0 %501  ;;  %v500_v12 = vpop.permute.xlu1 %499 }
 0x427   : > { %v503_v13 = vsel %vm347_vm2, %v500_v12, %v502_v11 }
 0x428   : > { %v510_v14 = vsel %vm360_vm5, %v493_v6, %v503_v13 }
 0x429   : > { %694 = vmatpush3.bf16.msra.mxu1 %v510_v14 }
 0x42a   : > { %v507_v15 = vpop.permute.xlu0 %506  ;;  %v505_v16 = vpop.permute.xlu1 %504  ;;  %695 = vmatprep.subr.bf16.mxu1 %v824_v2  ;;  %v566_v2 = vld [vmem:[%s1053_s7] sm:$0xf] }
 0x42b   : > { %v508_v17 = vsel %vm355_vm3, %v505_v16, %v507_v15 }
 0x42c   : > { %v524_v18 = vsel %vm360_vm5, %v508_v17, 0 }
 0x42d   : > { %696 = vmatpush3.bf16.msra.mxu1 %v524_v18 }
 0x430   : > { %698 = vmatmul.mubr.msk.bf16.vlgmr.msra.gmra.mrb[0].mxu1 %vm519_vm8, %v512_v19 }
 0x43b   : > { %v517_v20 = vpop.permute.xlu1 %516 }
 0x503   : > { %v560_v21 = vpop.f32.mrb[0].mxu1 }
 0x504   : > { %v561_v22 = vadd.f32 %v560_v21, %v517_v20  ;;  %v699_v23 = vpop.f32.mrb[1].mxu1 }
 0x505   : > { %v563_v24 = vpop.f32.mrb[2].mxu1 }
 0x506   : > { %v700_v25 = vpop.f32.mrb[3].mxu1  ;;  %v568_v26 = vsel %vm360_vm5, %v561_v22, 0.0 }
 0x507   : > { %569 = vadd.xlane.f32.xlu0 %v568_v26 }
 0x51d   : > { %583 = vperm.xlu0 %747, %v566_v2  }
 0x594   : > { %v570_v27 = vpop.xlane.xlu0 %569 }
 0x595   : > { %v571_v28 = vmul.f32 0.0078125, %v570_v27 }
 0x597   : > { %v572_v29 = vsub.f32 %v561_v22, %v571_v28 }
 0x599   : > { %v573_v30 = vmul.f32 %v572_v29, %v572_v29 }
 0x59b   : > { %v574_v31 = vsel %vm360_vm5, %v573_v30, 0.0 }
 0x59c   : > { %575 = vadd.xlane.f32.xlu1 %v574_v31  ;;  %v584_v38 = vpop.permute.xlu0 %583 }
 0x5ad   : > { %589 = vperm.xlu1 %746, %v567_v32  }
 0x629   : > { %v576_v33 = vpop.xlane.xlu1 %575 }
 0x62a   : > { %v577_v34 = vmul.f32 0.0078125, %v576_v33 }
 0x62c   : > { %v578_v35 = vadd.f32 1e-05, %v577_v34 }
 0x62d   : > { %v590_v40 = vpop.permute.xlu1 %589 }
 0x62e   : > { %757 = vrsqrt.f32 %v578_v35 }
 0x638   : > { %v758_v36 = vpop.eup %757 }
 0x639   : > { %v580_v37 = vmul.f32 %v758_v36, %v572_v29 }
 0x63b   : > { %v586_v39 = vmul.f32 %v584_v38, %v580_v37 }
 0x63d   : > { %v592_v41 = vadd.f32 %v590_v40, %v586_v39 }
 0x63f   : > { %v593_v42 = vadd.f32 %v592_v41, %v933_v0 }
 0x641   : > { %594 = vst [vmem:[%s323_s21] sm:$0xf] %v593_v42 }
 0x642   : > { %772 = shalt.err (!%p769_p3)
}
 0x643   : > { %s773_s14 = scalar_lea.hbm %s1004_s27, 64  ;;  %s777_s21 = scalar_lea.hbm %s1055_s9, 128 }
 0x644   : > { %p774_p4 = scmp.ne.s32.totalorder %s1004_s27, %s773_s14  ;;  %p778_p9 = scmp.lt.u32.totalorder %s1004_s27, %s1055_s9 }
 0x645   : > { %p779_p10 = scmp.lt.u32.totalorder %s777_s21, %s773_s14  ;;  %p781_p12 = scmp.lt.u32.totalorder %s773_s14, %s1004_s27 }
 0x646   : > { %p775_p7 = pnand %p774_p4, %p918_p5 }
 0x647   : > { %p780_p11 = por %p779_p10, %p778_p9 }
 0x648   : > { %p776_p8 = pneg %p775_p7 }
 0x649   : > { %p782_p13 = por %p781_p12, %p780_p11 }
 0x64b   : > { %p783_p0 = pnand %p782_p13, %p776_p8 }
 0x64d   : > { %786 = shalt.err (!%p783_p0)
}
 0x64e   : > { %701 = dma.vmem_to_hbm [thread:$0]  (%p918_p5), %s1006_s22, 64, %s1004_s27, %s596_s28  }
 0x64f PF: > { %p707_p1 = scmp.ge.s32.totalorder %s821_s12, 2  ;;  %s621_s24 = sand.u32 1, %s809_s30  }
 0x650   : > { %s622_s13 = scalar_lea.sflag [#allocation3], %s621_s24 }
 0x651   : > { %p704_p2 = pnand %p707_p1, %p922_p6 }
 0x653   : > { %804 = dma.done.wait (!%p704_p2), %s622_s13, 64  }
 0x654   : > { %806 = vsyncadd (!%p704_p2), %s622_s13, 4294967232  ;;  %p19_p3 = scmp.ge.s32.totalorder %s905_s15, 4   ;;  %s1058_s30 = smov %s813_s10 }
 0x655   : > { %s1059_s10 = smov %s817_s11  ;;  %s1060_s11 = smov %s916_s18 }
 0x656   : > { %s1061_s12 = smov %s905_s15  ;;  %21 = sbr.rel (!%p19_p3) target bundleno = 3 (0x3), region = 91 }
 0x65d   :  { %627 = vsyncpa [#allocation3], 1 }
 0x65e   :  { %629 = vsyncpa [#allocation3 + $0x1], 1 }

</bundles_post_ra>
